<compile_context>
chip_gen: v5e
topology: v5e:2x2
jax: 0.10.0
libtpu: 0.0.40
codegen_flags: <defaults>
</compile_context>

<pallas_src>
import functools

import jax
import jax.numpy as jnp
from jax.experimental import pallas as pl
from jax.experimental.pallas import tpu as pltpu

LN_EPS = 1e-5


def _layernorm(x, gamma, beta):
    mu = jnp.mean(x, axis=-1, keepdims=True)
    var = jnp.mean((x - mu) ** 2, axis=-1, keepdims=True)
    return (x - mu) * jax.lax.rsqrt(var + LN_EPS) * gamma + beta


def _nbytes(a):
    return int(a.size) * a.dtype.itemsize


def _vmem_budget_bytes():
    # Cap requested VMEM relative to the chip (v7x only has 64 MiB / TC).
    try:
        cap = int(pltpu.get_tpu_info().vmem_capacity_bytes)
    except Exception:
        cap = 128 << 20
    return int(0.75 * cap)


# --------------------------- kernel 1: LN1 + fused qkv ---------------------------
def qkv_kernel(scale, x_ref, ln1_g_ref, ln1_b_ref, wqkv_ref, bqkv_ref,
               q_ref, k_ref, v_ref):
    x = x_ref[...]                                           # (t1, D) f32
    D = x.shape[-1]
    y = _layernorm(x, ln1_g_ref[0], ln1_b_ref[0])            # f32
    # bf16 MXU operands, f32 accumulation.
    qkv = jnp.dot(y.astype(wqkv_ref.dtype), wqkv_ref[...],
                  preferred_element_type=jnp.float32) + bqkv_ref[0]
    # Fold the attention scale into q (removes an (H, tq, tk) multiply from
    # every KV step of kernel 2).  Lane-aligned static slices.
    q_ref[...] = (qkv[:, 0 * D:1 * D] * scale).astype(q_ref.dtype)
    k_ref[...] = qkv[:, 1 * D:2 * D].astype(k_ref.dtype)
    v_ref[...] = qkv[:, 2 * D:3 * D].astype(v_ref.dtype)


# ------- kernel 2: flash attention (heads batched) + out-proj + LN2 + MLP --------
def attn_mlp_kernel(num_heads, head_dim,
                    x_ref, q_ref, k_ref, v_ref,
                    wo_ref, bo_ref, ln2_g_ref, ln2_b_ref,
                    w1_ref, b1_ref, w2_ref, b2_ref,
                    o_ref,
                    q_sc, m_sc, l_sc, acc_sc):
    H, hd = num_heads, head_dim
    D = H * hd
    ki = pl.program_id(2)
    tq = q_ref.shape[1]
    tk = k_ref.shape[1]

    @pl.when(ki == 0)
    def _init():
        # q block is constant across the KV loop: do its lane->(H, hd) relayout
        # once per q-tile (it was already pre-scaled by 1/sqrt(hd) in kernel 1).
        q_sc[...] = q_ref[0].reshape(tq, H, hd)
        m_sc[...] = jnp.full(m_sc.shape, -jnp.inf, m_sc.dtype)
        l_sc[...] = jnp.zeros(l_sc.shape, l_sc.dtype)
        acc_sc[...] = jnp.zeros(acc_sc.shape, acc_sc.dtype)

    q = q_sc[...]                                            # (tq, H, hd) bf16
    k = k_ref[0].reshape(tk, H, hd)                          # bf16
    v = v_ref[0].reshape(tk, H, hd)                          # bf16

    # All heads in ONE batched MXU contraction; q already carries the scale.
    s = jnp.einsum("qhd,khd->hqk", q, k,
                   preferred_element_type=jnp.float32)       # (H, tq, tk) f32

    # Online softmax (flash) update, in f32.
    # TODO(synk): on v6e/v7x the exp can run in bf16 on the EUP (likely the
    # saturating unit for hd=32); kept f32 so the same kernel is safe on v5e.
    m_prev = m_sc[...]                                       # (H, tq, 1)
    m_new = jnp.maximum(m_prev, jnp.max(s, axis=-1, keepdims=True))
    alpha = jnp.exp(m_prev - m_new)
    p = jnp.exp(s - m_new)
    l_sc[...] = alpha * l_sc[...] + jnp.sum(p, axis=-1, keepdims=True)
    pv = jnp.einsum("hqk,khd->hqd", p.astype(v.dtype), v,
                    preferred_element_type=jnp.float32)      # (H, tq, hd)
    # TODO(synk): acc could be kept lane-dense as (tq, D) to avoid masked
    # hd=32 stores; needs a per-step alpha relayout, so left per-head here.
    acc_sc[...] = alpha * acc_sc[...] + pv
    m_sc[...] = m_new

    @pl.when(ki == pl.num_programs(2) - 1)
    def _epilogue():
        inv_l = pl.reciprocal(l_sc[...], approx=True)        # EUP, (H, tq, 1)
        # Out-projection: accumulate per-head dots straight into a lane-dense
        # (tq, D) buffer -- no (H, tq, D) f32 intermediate, no head-sum pass.
        attn_out = jnp.zeros((tq, D), jnp.float32)
        for h in range(H):                                   # static unroll, H small
            attn_h = (acc_sc[h] * inv_l[h]).astype(wo_ref.dtype)   # (tq, hd)
            attn_out = attn_out + jnp.dot(
                attn_h, wo_ref[h * hd:(h + 1) * hd, :],
                preferred_element_type=jnp.float32)
        x1 = x_ref[0] + attn_out + bo_ref[0]                 # residual 1

        z = _layernorm(x1, ln2_g_ref[0], ln2_b_ref[0])
        h1 = jnp.dot(z.astype(w1_ref.dtype), w1_ref[...],
                     preferred_element_type=jnp.float32) + b1_ref[0]
        h1 = jax.nn.gelu(h1, approximate=False)              # matches torch nn.GELU()
        m_out = jnp.dot(h1.astype(w2_ref.dtype), w2_ref[...],
                        preferred_element_type=jnp.float32) + b2_ref[0]
        o_ref[0] = (x1 + m_out).astype(o_ref.dtype)          # residual 2


def residual_self_attention_block(x, params, *, num_heads, head_dim,
                                  q_tile=128, kv_tile=256):
    B, S, D = x.shape
    assert D == num_heads * head_dim
    hidden = params["w1"].shape[1]

    tq = min(q_tile, S)
    tk = min(kv_tile, S)
    assert S % tq == 0 and S % tk == 0, "S must be divisible by the sequence tiles"

    bf16 = jnp.bfloat16
    # Weights -> bf16 for the MXU (halves HBM DMA + resident VMEM); LN params
    # and biases stay f32.
    wqkv = params["wqkv"].astype(bf16)
    wo = params["wo"].astype(bf16)
    w1 = params["w1"].astype(bf16)
    w2 = params["w2"].astype(bf16)

    budget = _vmem_budget_bytes()
    scale = 1.0 / float(head_dim) ** 0.5

    # Whole-array single-buffered VMEM residency for constant operands.
    const_vmem_spec = pl.BlockSpec(memory_space=pltpu.MemorySpace.VMEM)

    # ---------------- kernel 1: LN1 + fused qkv projection ----------------
    # HBM-bound: flatten (B, S) and use a big row tile, independent of q_tile.
    rows = B * S
    x2 = x.reshape(rows, D)
    t1 = rows
    for cand in (512, 256, 128, 64, 32, 16, 8):
        if rows % cand == 0:
            t1 = cand
            break

    qkv_vmem = (_nbytes(wqkv) + _nbytes(params["bqkv"])
                + _nbytes(params["ln1_g"]) + _nbytes(params["ln1_b"])
                + 2 * (t1 * D * 4) + 2 * 3 * (t1 * D * 2)
                + (8 << 20))
    q, k, v = pl.pallas_call(
        functools.partial(qkv_kernel, scale),
        out_shape=(jax.ShapeDtypeStruct((rows, D), bf16),) * 3,
        grid_spec=pltpu.PrefetchScalarGridSpec(
            num_scalar_prefetch=0,
            grid=(rows // t1,),
            in_specs=[
                pl.BlockSpec((t1, D), lambda i: (i, 0)),      # x (flattened rows)
                const_vmem_spec,                              # ln1 gamma
                const_vmem_spec,                              # ln1 beta
                const_vmem_spec,                              # wqkv (bf16)
                const_vmem_spec,                              # bqkv
            ],
            out_specs=[pl.BlockSpec((t1, D), lambda i: (i, 0))] * 3,
        ),
        compiler_params=pltpu.CompilerParams(
            dimension_semantics=("parallel",),
            vmem_limit_bytes=int(min(budget, max(32 << 20, qkv_vmem)))),
    )(x2, params["ln1_g"], params["ln1_b"], wqkv, params["bqkv"])

    q3 = q.reshape(B, S, D)
    k3 = k.reshape(B, S, D)
    v3 = v.reshape(B, S, D)

    # -------- kernel 2: flash attention + out proj + residual + LN2 + MLP --------
    # TODO(synk): for very large D (>= 1024) move the MLP into its own
    # pallas_call (or stream w1/w2 with pltpu.emit_pipeline) so its weights do
    # not occupy VMEM for the whole attention grid on v7x (64 MiB).
    weight_bytes = (_nbytes(wo) + _nbytes(w1) + _nbytes(w2)
                    + _nbytes(params["bo"]) + _nbytes(params["b1"])
                    + _nbytes(params["b2"]) + _nbytes(params["ln2_g"])
                    + _nbytes(params["ln2_b"]))
    act_bytes = 2 * (tq * D * 4 + tq * D * 2 + 2 * tk * D * 2) + 2 * tq * D * 4
    # scratch with (8,128) memref padding: q_sc + m/l/acc (lane-padded).
    scratch_bytes = (tq * 8 * 128 * 2
                     + 3 * num_heads * tq * 128 * 4)
    attn_vmem = weight_bytes + act_bytes + scratch_bytes + (8 << 20)

    kernel = functools.partial(attn_mlp_kernel, num_heads, head_dim)
    out = pl.pallas_call(
        kernel,
        out_shape=jax.ShapeDtypeStruct((B, S, D), x.dtype),
        grid_spec=pltpu.PrefetchScalarGridSpec(
            num_scalar_prefetch=0,
            # (B, Q_tiles) are parallel -> both v7x TensorCores busy when
            # B * (S // tq) >= 2; KV axis last and "arbitrary".
            grid=(B, S // tq, S // tk),
            in_specs=[
                pl.BlockSpec((1, tq, D), lambda b, qi, ki: (b, qi, 0)),   # x (residual)
                pl.BlockSpec((1, tq, D), lambda b, qi, ki: (b, qi, 0)),   # q (pre-scaled)
                pl.BlockSpec((1, tk, D), lambda b, qi, ki: (b, ki, 0)),   # k
                pl.BlockSpec((1, tk, D), lambda b, qi, ki: (b, ki, 0)),   # v
                const_vmem_spec,                                          # wo (bf16)
                const_vmem_spec,                                          # bo
                const_vmem_spec,                                          # ln2 gamma
                const_vmem_spec,                                          # ln2 beta
                const_vmem_spec,                                          # w1 (bf16)
                const_vmem_spec,                                          # b1
                const_vmem_spec,                                          # w2 (bf16)
                const_vmem_spec,                                          # b2
            ],
            out_specs=pl.BlockSpec((1, tq, D), lambda b, qi, ki: (b, qi, 0)),
            scratch_shapes=[
                pltpu.VMEM((tq, num_heads, head_dim), bf16),          # q relayout (hoisted)
                pltpu.VMEM((num_heads, tq, 1), jnp.float32),          # running max
                pltpu.VMEM((num_heads, tq, 1), jnp.float32),          # running sum
                pltpu.VMEM((num_heads, tq, head_dim), jnp.float32),   # output acc
            ],
        ),
        compiler_params=pltpu.CompilerParams(
            dimension_semantics=("parallel", "parallel", "arbitrary"),
            vmem_limit_bytes=int(min(budget, max(32 << 20, attn_vmem)))),
    )(x, q3, k3, v3,
      wo, params["bo"], params["ln2_g"], params["ln2_b"],
      w1, params["b1"], w2, params["b2"])
    return out


def reference(x, params, *, num_heads, head_dim):
    """Pure-JAX f32 reference matching the PyTorch module semantics."""
    B, S, D = x.shape

    def ln(t, g, b):
        mu = t.mean(-1, keepdims=True)
        var = ((t - mu) ** 2).mean(-1, keepdims=True)
        return (t - mu) / jnp.sqrt(var + LN_EPS) * g + b

    y = ln(x, params["ln1_g"][0], params["ln1_b"][0])
    qkv = y @ params["wqkv"] + params["bqkv"][0]
    q, k, v = jnp.split(qkv, 3, axis=-1)

    def heads(t):
        return t.reshape(B, S, num_heads, head_dim).transpose(0, 2, 1, 3)

    qh, kh, vh = heads(q), heads(k), heads(v)
    s = jnp.einsum("bhqd,bhkd->bhqk", qh, kh) / jnp.sqrt(head_dim)
    p = jax.nn.softmax(s, axis=-1)
    o = jnp.einsum("bhqk,bhkd->bhqd", p, vh).transpose(0, 2, 1, 3).reshape(B, S, D)
    attn = o @ params["wo"] + params["bo"][0]
    x1 = x + attn

    z = ln(x1, params["ln2_g"][0], params["ln2_b"][0])
    h = jax.nn.gelu(z @ params["w1"] + params["b1"][0], approximate=False)
    m = h @ params["w2"] + params["b2"][0]
    return x1 + m


if __name__ == "__main__":
    # Small but lane-dense shapes: width D = num_heads * inner_product_channels = 128.
    B, S = 2, 16
    NUM_HEADS, HEAD_DIM = 4, 32
    D = NUM_HEADS * HEAD_DIM
    HIDDEN = 4 * D

    key = jax.random.PRNGKey(0)
    ks = jax.random.split(key, 12)

    def init(k, shape, scale=0.05):
        return (scale * jax.random.normal(k, shape)).astype(jnp.float32)

    params = dict(
        ln1_g=1.0 + init(ks[0], (1, D)),
        ln1_b=init(ks[1], (1, D)),
        wqkv=init(ks[2], (D, 3 * D)),
        bqkv=init(ks[3], (1, 3 * D)),      # qkv_bias=True
        wo=init(ks[4], (D, D)),
        bo=init(ks[5], (1, D)),
        ln2_g=1.0 + init(ks[6], (1, D)),
        ln2_b=init(ks[7], (1, D)),
        w1=init(ks[8], (D, HIDDEN)),
        b1=init(ks[9], (1, HIDDEN)),
        w2=init(ks[10], (HIDDEN, D)),
        b2=init(ks[11], (1, D)),
    )

    x = jax.random.normal(jax.random.PRNGKey(1), (B, S, D), jnp.float32)

    out = jax.block_until_ready(
        residual_self_attention_block(x, params, num_heads=NUM_HEADS, head_dim=HEAD_DIM))
    ref = jax.block_until_ready(
        reference(x, params, num_heads=NUM_HEADS, head_dim=HEAD_DIM))

    assert out.shape == (B, S, D) and out.dtype == jnp.float32
    err = float(jnp.max(jnp.abs(out - ref)))
    # bf16 MXU operands + approx reciprocal => looser tolerance than pure f32.
    assert err < 5e-2, f"max abs err {err}"
    print("KERNEL_OK")
</pallas_src>

<mosaic_0001>
module attributes {stable_mosaic.version = 11 : i64} {
  func.func @qkv_kernel(%arg0: i32, %arg1: memref<32x128xf32, #tpu.memory_space<vmem>>, %arg2: memref<1x128xf32, #tpu.memory_space<vmem>>, %arg3: memref<1x128xf32, #tpu.memory_space<vmem>>, %arg4: memref<128x384xbf16, #tpu.memory_space<vmem>>, %arg5: memref<1x384xf32, #tpu.memory_space<vmem>>, %arg6: memref<32x128xbf16, #tpu.memory_space<vmem>>, %arg7: memref<32x128xbf16, #tpu.memory_space<vmem>>, %arg8: memref<32x128xbf16, #tpu.memory_space<vmem>>) attributes {dimension_semantics = [#tpu.dimension_semantics<parallel>], iteration_bounds = array<i64: 1>, scalar_prefetch = 0 : i64, scratch_operands = 0 : i64, tpu.core_type = #tpu.core_type<tc>, window_params = [{transform_indices = @transform_0, window_bounds = array<i64: 32, 128>}, {pipeline_mode = #tpu.pipeline_mode<synchronous>, transform_indices = @transform_1, window_bounds = array<i64: 1, 128>}, {pipeline_mode = #tpu.pipeline_mode<synchronous>, transform_indices = @transform_2, window_bounds = array<i64: 1, 128>}, {pipeline_mode = #tpu.pipeline_mode<synchronous>, transform_indices = @transform_3, window_bounds = array<i64: 128, 384>}, {pipeline_mode = #tpu.pipeline_mode<synchronous>, transform_indices = @transform_4, window_bounds = array<i64: 1, 384>}, {transform_indices = @transform_5, window_bounds = array<i64: 32, 128>}, {transform_indices = @transform_6, window_bounds = array<i64: 32, 128>}, {transform_indices = @transform_7, window_bounds = array<i64: 32, 128>}]} {
    %c0 = arith.constant 0 : index
    %c0_0 = arith.constant 0 : index
    %0 = vector.load %arg1[%c0, %c0_0] : memref<32x128xf32, #tpu.memory_space<vmem>>, vector<32x128xf32>
    %c0_1 = arith.constant 0 : index
    %c0_2 = arith.constant 0 : index
    %1 = vector.load %arg2[%c0_1, %c0_2] : memref<1x128xf32, #tpu.memory_space<vmem>>, vector<1x128xf32>
    %2 = vector.shape_cast %1 : vector<1x128xf32> to vector<128xf32>
    %c0_3 = arith.constant 0 : index
    %c0_4 = arith.constant 0 : index
    %3 = vector.load %arg3[%c0_3, %c0_4] : memref<1x128xf32, #tpu.memory_space<vmem>>, vector<1x128xf32>
    %4 = vector.shape_cast %3 : vector<1x128xf32> to vector<128xf32>
    %cst = arith.constant dense<0.000000e+00> : vector<32xf32>
    %5 = vector.multi_reduction <add>, %0, %cst [1] : vector<32x128xf32> to vector<32xf32>
    %6 = vector.shape_cast %5 : vector<32xf32> to vector<32x1xf32>
    %cst_5 = arith.constant 1.280000e+02 : f32
    %7 = vector.broadcast %cst_5 : f32 to vector<32x1xf32>
    %8 = arith.divf %6, %7 : vector<32x1xf32>
    %9 = vector.broadcast %8 : vector<32x1xf32> to vector<32x128xf32>
    %10 = arith.subf %0, %9 : vector<32x128xf32>
    %11 = arith.mulf %10, %10 : vector<32x128xf32>
    %cst_6 = arith.constant dense<0.000000e+00> : vector<32xf32>
    %12 = vector.multi_reduction <add>, %11, %cst_6 [1] : vector<32x128xf32> to vector<32xf32>
    %13 = vector.shape_cast %12 : vector<32xf32> to vector<32x1xf32>
    %cst_7 = arith.constant 1.280000e+02 : f32
    %14 = vector.broadcast %cst_7 : f32 to vector<32x1xf32>
    %15 = arith.divf %13, %14 : vector<32x1xf32>
    %16 = vector.broadcast %8 : vector<32x1xf32> to vector<32x128xf32>
    %17 = arith.subf %0, %16 : vector<32x128xf32>
    %cst_8 = arith.constant 9.99999974E-6 : f32
    %18 = vector.broadcast %cst_8 : f32 to vector<32x1xf32>
    %19 = arith.addf %15, %18 : vector<32x1xf32>
    %20 = math.rsqrt %19 : vector<32x1xf32>
    %21 = vector.broadcast %20 : vector<32x1xf32> to vector<32x128xf32>
    %22 = arith.mulf %17, %21 : vector<32x128xf32>
    %23 = vector.shape_cast %2 : vector<128xf32> to vector<1x128xf32>
    %24 = vector.broadcast %23 : vector<1x128xf32> to vector<32x128xf32>
    %25 = arith.mulf %22, %24 : vector<32x128xf32>
    %26 = vector.shape_cast %4 : vector<128xf32> to vector<1x128xf32>
    %27 = vector.broadcast %26 : vector<1x128xf32> to vector<32x128xf32>
    %28 = arith.addf %25, %27 : vector<32x128xf32>
    %29 = arith.truncf %28 : vector<32x128xf32> to vector<32x128xbf16>
    %c0_9 = arith.constant 0 : index
    %c0_10 = arith.constant 0 : index
    %30 = vector.load %arg4[%c0_9, %c0_10] : memref<128x384xbf16, #tpu.memory_space<vmem>>, vector<128x384xbf16>
    %cst_11 = arith.constant dense<0.000000e+00> : vector<32x384xf32>
    %31 = tpu.matmul %29, %30, %cst_11 {dimension_numbers = #tpu.dot_dimension_numbers<[1], [0], [0], [1], [0, 0, 1, 1], [], []>} : vector<32x128xbf16>, vector<128x384xbf16>, vector<32x384xf32> -> vector<32x384xf32>
    %c0_12 = arith.constant 0 : index
    %c0_13 = arith.constant 0 : index
    %32 = vector.load %arg5[%c0_12, %c0_13] : memref<1x384xf32, #tpu.memory_space<vmem>>, vector<1x384xf32>
    %33 = vector.shape_cast %32 : vector<1x384xf32> to vector<384xf32>
    %34 = vector.shape_cast %33 : vector<384xf32> to vector<1x384xf32>
    %35 = vector.broadcast %34 : vector<1x384xf32> to vector<32x384xf32>
    %36 = arith.addf %31, %35 : vector<32x384xf32>
    %37 = vector.extract_strided_slice %36 {offsets = [0, 0], sizes = [32, 128], strides = [1, 1]} : vector<32x384xf32> to vector<32x128xf32>
    %cst_14 = arith.constant 0.176776692 : f32
    %38 = vector.broadcast %cst_14 : f32 to vector<32x128xf32>
    %39 = arith.mulf %37, %38 : vector<32x128xf32>
    %40 = arith.truncf %39 : vector<32x128xf32> to vector<32x128xbf16>
    %c0_15 = arith.constant 0 : index
    %c0_16 = arith.constant 0 : index
    %41 = vector.load %arg6[%c0_15, %c0_16] : memref<32x128xbf16, #tpu.memory_space<vmem>>, vector<32x128xbf16>
    tpu.vector_store %arg6[%c0_15, %c0_16], %40 {strides = array<i32>} : memref<32x128xbf16, #tpu.memory_space<vmem>>, vector<32x128xbf16>,
    %42 = vector.extract_strided_slice %36 {offsets = [0, 128], sizes = [32, 128], strides = [1, 1]} : vector<32x384xf32> to vector<32x128xf32>
    %43 = arith.truncf %42 : vector<32x128xf32> to vector<32x128xbf16>
    %c0_17 = arith.constant 0 : index
    %c0_18 = arith.constant 0 : index
    %44 = vector.load %arg7[%c0_17, %c0_18] : memref<32x128xbf16, #tpu.memory_space<vmem>>, vector<32x128xbf16>
    tpu.vector_store %arg7[%c0_17, %c0_18], %43 {strides = array<i32>} : memref<32x128xbf16, #tpu.memory_space<vmem>>, vector<32x128xbf16>,
    %45 = vector.extract_strided_slice %36 {offsets = [0, 256], sizes = [32, 128], strides = [1, 1]} : vector<32x384xf32> to vector<32x128xf32>
    %46 = arith.truncf %45 : vector<32x128xf32> to vector<32x128xbf16>
    %c0_19 = arith.constant 0 : index
    %c0_20 = arith.constant 0 : index
    %47 = vector.load %arg8[%c0_19, %c0_20] : memref<32x128xbf16, #tpu.memory_space<vmem>>, vector<32x128xbf16>
    tpu.vector_store %arg8[%c0_19, %c0_20], %46 {strides = array<i32>} : memref<32x128xbf16, #tpu.memory_space<vmem>>, vector<32x128xbf16>,
    return
  }
  func.func @transform_0(%arg0: i32) -> (i32, i32) {
    %c0_i32 = arith.constant 0 : i32
    %c0_i32_0 = arith.constant 0 : i32
    return %arg0, %c0_i32 : i32, i32
  }
  func.func @transform_1(%arg0: i32) -> (i32, i32) {
    %c0_i32 = arith.constant 0 : i32
    %c0_i32_0 = arith.constant 0 : i32
    %c0_i32_1 = arith.constant 0 : i32
    return %c0_i32, %c0_i32_0 : i32, i32
  }
  func.func @transform_2(%arg0: i32) -> (i32, i32) {
    %c0_i32 = arith.constant 0 : i32
    %c0_i32_0 = arith.constant 0 : i32
    %c0_i32_1 = arith.constant 0 : i32
    return %c0_i32, %c0_i32_0 : i32, i32
  }
  func.func @transform_3(%arg0: i32) -> (i32, i32) {
    %c0_i32 = arith.constant 0 : i32
    %c0_i32_0 = arith.constant 0 : i32
    %c0_i32_1 = arith.constant 0 : i32
    return %c0_i32, %c0_i32_0 : i32, i32
  }
  func.func @transform_4(%arg0: i32) -> (i32, i32) {
    %c0_i32 = arith.constant 0 : i32
    %c0_i32_0 = arith.constant 0 : i32
    %c0_i32_1 = arith.constant 0 : i32
    return %c0_i32, %c0_i32_0 : i32, i32
  }
  func.func @transform_5(%arg0: i32) -> (i32, i32) {
    %c0_i32 = arith.constant 0 : i32
    %c0_i32_0 = arith.constant 0 : i32
    return %arg0, %c0_i32 : i32, i32
  }
  func.func @transform_6(%arg0: i32) -> (i32, i32) {
    %c0_i32 = arith.constant 0 : i32
    %c0_i32_0 = arith.constant 0 : i32
    return %arg0, %c0_i32 : i32, i32
  }
  func.func @transform_7(%arg0: i32) -> (i32, i32) {
    %c0_i32 = arith.constant 0 : i32
    %c0_i32_0 = arith.constant 0 : i32
    return %arg0, %c0_i32 : i32, i32
  }
}

</mosaic_0001>

<bundles_post_ra>
// kernel: tpu_custom_call.1
= control target key start
LH: loop header
LB: loop body
LE: loop exit
PB: predicated region body
PF: predicated region fallthrough
CT: control target
= control target key end

     0   :  { %13 = vsyncpa [#allocation3], 0  ;;  %s975_s0 = inlined_call_operand.hbm [shape: f32[32,128], index: 0, kind: input, shape index: {}]   ;;  %s976_s1 = inlined_call_operand.hbm [shape: f32[1,128], index: 1, kind: input, shape index: {}]   ;;  %s977_s2 = inlined_call_operand.hbm [shape: f32[1,128], index: 2, kind: input, shape index: {}]   ;;  %s978_s3 = inlined_call_operand.hbm [shape: bf16[128,384], index: 3, kind: input, shape index: {}]   ;;  %s979_s4 = inlined_call_operand.vmem [shape: f32[1,384], index: 4, kind: input, shape index: {}]   ;;  %s980_s5 = inlined_call_operand.hbm [shape: bf16[32,128], index: 5, kind: output, shape index: {0}]   ;;  %s981_s6 = inlined_call_operand.hbm [shape: bf16[32,128], index: 6, kind: output, shape index: {1}]   ;;  %s982_s7 = inlined_call_operand.hbm [shape: bf16[32,128], index: 7, kind: output, shape index: {2}]  }
   0x1   :  { %14 = vsyncpa [#allocation6], 0 }
   0x2   :  { %15 = vsyncpa [#allocation9], 0 }
   0x3   :  { %16 = vsyncpa [#allocation4], 0  ;;  %s36_s26 = sshll.u32 %s976_s1, 4  ;;  %s37_s26 = int_to_ptr.hbm [resolvable:$true] %s36_s26 }
   0x4   :  { %17 = vsyncpa [#allocation12], 0  ;;  %s867_s27 = smov [#allocation5]   ;;  %s22_s8 = sshll.u32 %s975_s0, 4  ;;  %s23_s8 = int_to_ptr.hbm [resolvable:$true] %s22_s8 }
   0x5   :  { %s38_s28 = sshll.u32 %s867_s27, 4  ;;  %s868_s9 = smov [#allocation2]   ;;  %s39_s28 = int_to_ptr.vmem [resolvable:$true] %s38_s28 }
   0x6   :  { %41 = dma.hbm_to_vmem [thread:$0]  %s37_s26, 16, %s39_s28, [#allocation6]  }
   0x7   :  { %s24_s10 = sshll.u32 %s868_s9, 4  ;;  %s869_s11 = smov 128   ;;  %s25_s10 = int_to_ptr.vmem [resolvable:$true] %s24_s10 }
   0x8   :  { %s870_s12 = smov 8   ;;  %s47_s1 = sshll.u32 %s977_s2, 4  ;;  %s48_s1 = int_to_ptr.hbm [resolvable:$true] %s47_s1 }
   0x9   :  { %30 = dma.hbm_to_vmem [thread:$0]  %s23_s8, 512, %s25_s10, [#allocation3], %s869_s11, %s869_s11, %s870_s12  }
   0xa   :  { %s871_s15 = smov [#allocation7]   ;;  %s57_s0 = sshll.u32 %s978_s3, 4  ;;  %s58_s0 = int_to_ptr.hbm [resolvable:$true] %s57_s0 }
   0xb   :  { %s49_s16 = sshll.u32 %s871_s15, 4  ;;  %s872_s19 = smov [#allocation8]   ;;  %s50_s16 = int_to_ptr.vmem [resolvable:$true] %s49_s16 }
   0xc   :  { %52 = dma.hbm_to_vmem [thread:$0]  %s48_s1, 16, %s50_s16, [#allocation6]  }
   0xd   :  { %s59_s20 = sshll.u32 %s872_s19, 4  ;;  %s873_s21 = smov 192   ;;  %s60_s20 = int_to_ptr.vmem [resolvable:$true] %s59_s20 }
   0xe   :  { %s874_s22 = smov 12  }
   0xf   :  { %65 = dma.hbm_to_vmem [thread:$0]  %s58_s0, 3072, %s60_s20, [#allocation9], %s873_s21, %s873_s21, %s874_s22  }
  0x10   :  { %857 = dma.done.wait [#allocation3], 512  }
  0x11   :  { %858 = vsyncadd [#allocation3], 4294966784 }
  0x12   :  { %859 = dma.done.wait [#allocation6], 32  }
  0x13   :  { %860 = vsyncadd [#allocation6], 4294967264 }
  0x14   :  { %861 = dma.done.wait [#allocation9], 3072  }
  0x15   :  { %862 = vsyncadd [#allocation9], 4294964224  ;;  %v86_v0 = vld [vmem:[#allocation2 + $0x10] sm:$0xff]  ;;  %v84_v1 = vld [vmem:[#allocation2] sm:$0xff]  ;;  %v875_v4 = vmov 128.0   ;;  %s452_s26 = sshll.u32 %s980_s5, 4  ;;  %s453_s26 = int_to_ptr.hbm [resolvable:$true] %s452_s26 }
  0x16   :  { %94 = vadd.xlane.f32.xlu1 %v86_v0  ;;  %90 = vadd.xlane.f32.xlu0 %v84_v1  ;;  %v87_v2 = vld [vmem:[#allocation2 + $0x18] sm:$0xff]  ;;  %v85_v3 = vld [vmem:[#allocation2 + $0x8] sm:$0xff]  ;;  %679 = vrcp.f32 %v875_v4  ;;  %v619_v29 = vld [vmem:[#allocation8 + $0xac] sm:$0xf]  ;;  %s877_s27 = smov 64   ;;  %s878_s28 = smov 4  }
  0x17   :  { %v588_v27 = vld [vmem:[#allocation8 + $0xa8] sm:$0xf]  ;;  %v620_v28 = vld [vmem:[#allocation8 + $0xb0] sm:$0xf0]  ;;  %v590_v31 = vld [vmem:[#allocation8 + $0xb4] sm:$0xf0] }
  0x18   :  { %v589_v30 = vor.u32 %v620_v28, %v588_v27  ;;  %v596_v32 = vld [vmem:[#allocation8 + $0xb0] sm:$0xf]  ;;  %v621_v33 = vld [vmem:[#allocation8 + $0xb8] sm:$0xf0]  ;;  %v593_v34 = vor.u32 %v619_v29, %v590_v31  ;;  %v616_v38 = vld [vmem:[#allocation8 + $0x94] sm:$0xf] }
  0x19   :  { %v597_v35 = vor.u32 %v621_v33, %v596_v32  ;;  %v576_v36 = vld [vmem:[#allocation8 + $0x90] sm:$0xf]  ;;  %v617_v37 = vld [vmem:[#allocation8 + $0x98] sm:$0xf0]  ;;  %v578_v40 = vld [vmem:[#allocation8 + $0x9c] sm:$0xf0] }
  0x1a   :  { %361 = vmatpush.bf16.msra.mxu0 %v589_v30  ;;  %655 = vmatpush.bf16.msra.mxu3 %v589_v30  ;;  %v577_v39 = vor.u32 %v617_v37, %v576_v36  ;;  %v584_v41 = vld [vmem:[#allocation8 + $0x98] sm:$0xf]  ;;  %v618_v42 = vld [vmem:[#allocation8 + $0xa0] sm:$0xf0]  ;;  %v581_v43 = vor.u32 %v616_v38, %v578_v40  ;;  %v613_v47 = vld [vmem:[#allocation8 + $0x7c] sm:$0xf] }
  0x1b   :  { %380 = vmatpush.bf16.msra.mxu1 %v593_v34  ;;  %399 = vmatpush.bf16.msra.mxu2 %v597_v35  ;;  %v585_v44 = vor.u32 %v618_v42, %v584_v41  ;;  %v564_v45 = vld [vmem:[#allocation8 + $0x78] sm:$0xf]  ;;  %v614_v46 = vld [vmem:[#allocation8 + $0x80] sm:$0xf0]  ;;  %v566_v49 = vld [vmem:[#allocation8 + $0x84] sm:$0xf0] }
  0x1c   :  { %v680_v5 = vpop.eup %679  ;;  %v565_v48 = vor.u32 %v614_v46, %v564_v45  ;;  %v572_v50 = vld [vmem:[#allocation8 + $0x80] sm:$0xf]  ;;  %v615_v51 = vld [vmem:[#allocation8 + $0x88] sm:$0xf0]  ;;  %v569_v52 = vor.u32 %v613_v47, %v566_v49  ;;  %v610_v56 = vld [vmem:[#allocation8 + $0x64] sm:$0xf] }
  0x1d   :  { %v99_v6 = vmul.f32 128.0, %v680_v5  ;;  %vm103_vm0 = vweird.f32 %v680_v5  ;;  %v573_v53 = vor.u32 %v615_v51, %v572_v50  ;;  %v552_v54 = vld [vmem:[#allocation8 + $0x60] sm:$0xf]  ;;  %v611_v55 = vld [vmem:[#allocation8 + $0x68] sm:$0xf0]  ;;  %s879_s29 = smov [#allocation11]  }
  0x1e   :  { %96 = vadd.xlane.f32.xlu1 %v87_v2  ;;  %92 = vadd.xlane.f32.xlu0 %v85_v3  ;;  %v553_v57 = vor.u32 %v611_v55, %v552_v54  ;;  %v554_v58 = vld [vmem:[#allocation8 + $0x6c] sm:$0xf0]  ;;  %v560_v59 = vld [vmem:[#allocation8 + $0x68] sm:$0xf]  ;;  %v612_v60 = vld [vmem:[#allocation8 + $0x70] sm:$0xf0] }
  0x1f   :  { %v100_v7 = vsub.f32 1.0, %v99_v6  ;;  %362 = vmatpush.bf16.msra.mxu0 %v577_v39  ;;  %656 = vmatpush.bf16.msra.mxu3 %v577_v39  ;;  %v557_v61 = vor.u32 %v610_v56, %v554_v58  ;;  %v561_v62 = vor.u32 %v612_v60, %v560_v59  ;;  %v540_v63 = vld [vmem:[#allocation8 + $0x48] sm:$0xf]  ;;  %v548_v4 = vld [vmem:[#allocation8 + $0x50] sm:$0xf]  ;;  %s463_s30 = sshll.u32 %s879_s29, 4  ;;  %s464_s30 = int_to_ptr.vmem [resolvable:$true] %s463_s30 }
  0x20   :  { %381 = vmatpush.bf16.msra.mxu1 %v581_v43  ;;  %400 = vmatpush.bf16.msra.mxu2 %v585_v44  ;;  %v524_v27 = vld [vmem:[#allocation8 + $0x20] sm:$0xf]  ;;  %v603_v28 = vld [vmem:[#allocation8 + $0x28] sm:$0xf0]  ;;  %v598_v35 = vld [vmem:[#allocation8 + $0x4] sm:$0xf] }
  0x21   :  { %v101_v8 = vmul.f32 %v680_v5, %v100_v7  ;;  %v525_v32 = vor.u32 %v603_v28, %v524_v27  ;;  %v504_v33 = vld [vmem:[#allocation8] sm:$0xf]  ;;  %v599_v34 = vld [vmem:[#allocation8 + $0x8] sm:$0xf0]  ;;  %v506_v39 = vld [vmem:[#allocation8 + $0xc] sm:$0xf0] }
  0x22   :  { %v505_v38 = vor.u32 %v599_v34, %v504_v33  ;;  %v512_v40 = vld [vmem:[#allocation8 + $0x8] sm:$0xf]  ;;  %v600_v41 = vld [vmem:[#allocation8 + $0x10] sm:$0xf0]  ;;  %v509_v42 = vor.u32 %v598_v35, %v506_v39  ;;  %s465_s9 = sshll.u32 %s981_s6, 4  ;;  %s880_s10 = smov [#allocation13]   ;;  %s466_s9 = int_to_ptr.hbm [resolvable:$true] %s465_s9 }
  0x23   :  { %v102_v9 = vadd.f32 %v680_v5, %v101_v8  ;;  %363 = vmatpush.bf16.msra.mxu0 %v565_v48  ;;  %657 = vmatpush.bf16.msra.mxu3 %v565_v48  ;;  %v528_v8 = vld [vmem:[#allocation8 + $0x30] sm:$0xf]  ;;  %v513_v43 = vor.u32 %v600_v41, %v512_v40  ;;  %s476_s11 = sshll.u32 %s880_s10, 4  ;;  %s478_s14 = sshll.u32 %s982_s7, 4  ;;  %s477_s11 = int_to_ptr.vmem [resolvable:$true] %s476_s11  ;;  %s479_s14 = int_to_ptr.hbm [resolvable:$true] %s478_s14 }
  0x24   :  { %382 = vmatpush.bf16.msra.mxu1 %v569_v52  ;;  %401 = vmatpush.bf16.msra.mxu2 %v573_v53 }
  0x25   :  { %v933_v10 = vsel %vm103_vm0, %v680_v5, %v102_v9  ;;  %v609_v5 = vld [vmem:[#allocation8 + $0x58] sm:$0xf0] }
  0x26   :  { %v549_v7 = vor.u32 %v609_v5, %v548_v4  ;;  %v605_v9 = vld [vmem:[#allocation8 + $0x38] sm:$0xf0] }
  0x27   :  { %364 = vmatpush.bf16.msra.mxu0 %v553_v57  ;;  %658 = vmatpush.bf16.msra.mxu3 %v553_v57 }
  0x28   :  { %383 = vmatpush.bf16.msra.mxu1 %v557_v61  ;;  %402 = vmatpush.bf16.msra.mxu2 %v561_v62 }
  0x2c   :  { %403 = vmatpush.bf16.msra.mxu2 %v549_v7 }
  0x89   :  { %v95_v11 = vpop.xlane.xlu1 %94  ;;  %v91_v12 = vpop.xlane.xlu0 %90 }
  0x8a   :  { %v107_v13 = vmul.f32 %v933_v10, %v95_v11  ;;  %v105_v14 = vmul.f32 %v933_v10, %v91_v12  ;;  %v604_v11 = vld [vmem:[#allocation8 + $0x34] sm:$0xf]  ;;  %v529_v12 = vor.u32 %v605_v9, %v528_v8 }
  0x8c   :  { %v937_v15 = vsub.f32 %v86_v0, %v107_v13  ;;  %v939_v16 = vsub.f32 %v84_v1, %v105_v14  ;;  %v608_v0 = vld [vmem:[#allocation8 + $0x50] sm:$0xf0]  ;;  %v607_v1 = vld [vmem:[#allocation8 + $0x4c] sm:$0xf]  ;;  %v530_v13 = vld [vmem:[#allocation8 + $0x3c] sm:$0xf0] }
  0x8d   :  { %v536_v14 = vld [vmem:[#allocation8 + $0x38] sm:$0xf] }
  0x8e   :  { %v115_v17 = vmul.f32 %v937_v15, %v937_v15  ;;  %v113_v18 = vmul.f32 %v939_v16, %v939_v16 }
  0x90   :  { %121 = vadd.xlane.f32.xlu0 %v115_v17  ;;  %117 = vadd.xlane.f32.xlu2 %v113_v18  ;;  %v606_v17 = vld [vmem:[#allocation8 + $0x40] sm:$0xf0]  ;;  %v533_v18 = vor.u32 %v604_v11, %v530_v13  ;;  %v677_v13 = vld [vmem:[#allocation5] ss:$0 sm:$0xff] }
  0x91   :  { %v97_v19 = vpop.xlane.xlu1 %96  ;;  %v93_v20 = vpop.xlane.xlu0 %92 }
  0x92   :  { %v108_v21 = vmul.f32 %v933_v10, %v97_v19  ;;  %v106_v22 = vmul.f32 %v933_v10, %v93_v20  ;;  %v537_v19 = vor.u32 %v606_v17, %v536_v14  ;;  %v516_v20 = vld [vmem:[#allocation8 + $0x18] sm:$0xf] }
  0x94   :  { %v947_v23 = vsub.f32 %v87_v2, %v108_v21  ;;  %v949_v24 = vsub.f32 %v85_v3, %v106_v22  ;;  %v541_v2 = vor.u32 %v608_v0, %v540_v63  ;;  %v542_v3 = vld [vmem:[#allocation8 + $0x54] sm:$0xf0]  ;;  %404 = vmatpush.bf16.msra.mxu2 %v537_v19  ;;  %v602_v21 = vld [vmem:[#allocation8 + $0x20] sm:$0xf0]  ;;  %v601_v22 = vld [vmem:[#allocation8 + $0x1c] sm:$0xf] }
  0x95   :  { %v545_v6 = vor.u32 %v607_v1, %v542_v3 }
  0x96   :  { %v116_v25 = vmul.f32 %v947_v23, %v947_v23  ;;  %v114_v26 = vmul.f32 %v949_v24, %v949_v24  ;;  %365 = vmatpush.bf16.msra.mxu0 %v541_v2  ;;  %659 = vmatpush.bf16.msra.mxu3 %v541_v2 }
  0x97   :  { %384 = vmatpush.bf16.msra.mxu1 %v545_v6 }
  0x98   :  { %123 = vadd.xlane.f32.xlu1 %v116_v25  ;;  %119 = vadd.xlane.f32.xlu2 %v114_v26  ;;  %v517_v25 = vor.u32 %v602_v21, %v516_v20  ;;  %v518_v26 = vld [vmem:[#allocation8 + $0x24] sm:$0xf0] }
  0x99   :  { %v521_v31 = vor.u32 %v601_v22, %v518_v26  ;;  %405 = vmatpush.bf16.msra.mxu2 %v525_v32  ;;  %v678_v22 = vld [vmem:[#allocation7] ss:$0 sm:$0xff] }
  0x9a   :  { %366 = vmatpush.bf16.msra.mxu0 %v529_v12  ;;  %660 = vmatpush.bf16.msra.mxu3 %v529_v12 }
  0x9b   :  { %385 = vmatpush.bf16.msra.mxu1 %v533_v18 }
  0x9d   :  { %406 = vmatpush.bf16.msra.mxu2 %v513_v43 }
  0x9e   :  { %367 = vmatpush.bf16.msra.mxu0 %v517_v25  ;;  %661 = vmatpush.bf16.msra.mxu3 %v517_v25 }
  0x9f   :  { %386 = vmatpush.bf16.msra.mxu1 %v521_v31 }
  0xa2   :  { %368 = vmatpush.bf16.msra.mxu0 %v505_v38  ;;  %662 = vmatpush.bf16.msra.mxu3 %v505_v38 }
  0xa3   :  { %387 = vmatpush.bf16.msra.mxu1 %v509_v42 }
 0x103   :  { %v118_v29 = vpop.xlane.xlu2 %117  ;;  %v122_v30 = vpop.xlane.xlu0 %121 }
 0x104   :  { %v125_v36 = vmul.f32 %v118_v29, %v933_v10  ;;  %v127_v37 = vmul.f32 %v122_v30, %v933_v10 }
 0x106   :  { %v129_v44 = vadd.f32 1e-05, %v125_v36  ;;  %v131_v45 = vadd.f32 1e-05, %v127_v37 }
 0x108   :  { %681 = vrsqrt.f32 %v129_v44  ;;  %vm159_vm1 = vweird.f32 %v131_v45  ;;  %vm139_vm5 = vweird.f32 %v129_v44 }
 0x109   :  { %683 = vrsqrt.f32 %v131_v45 }
 0x10b   :  { %v124_v46 = vpop.xlane.xlu1 %123  ;;  %v120_v47 = vpop.xlane.xlu2 %119 }
 0x10c   :  { %v128_v48 = vmul.f32 %v124_v46, %v933_v10  ;;  %v126_v49 = vmul.f32 %v120_v47, %v933_v10 }
 0x10e   :  { %v682_v50 = vpop.eup %681  ;;  %v132_v51 = vadd.f32 1e-05, %v128_v48  ;;  %v130_v52 = vadd.f32 1e-05, %v126_v49 }
 0x10f   :  { %v684_v53 = vpop.eup %683  ;;  %v134_v54 = vmul.f32 %v682_v50, %v129_v44  ;;  %vm140_vm3 = vweird.f32 %v682_v50 }
 0x110   :  { %v154_v55 = vmul.f32 %v684_v53, %v131_v45  ;;  %685 = vrsqrt.f32 %v132_v51  ;;  %vm160_vm2 = vweird.f32 %v684_v53  ;;  %vm141_vm6 = vmor %vm139_vm5, %vm140_vm3  ;;  %vm169_vm7 = vweird.f32 %v132_v51 }
 0x111   :  { %v135_v56 = vmul.f32 %v682_v50, %v134_v54  ;;  %687 = vrsqrt.f32 %v130_v52  ;;  %vm161_vm4 = vmor %vm159_vm1, %vm160_vm2  ;;  %vm149_vm11 = vweird.f32 %v130_v52 }
 0x112   :  { %v155_v57 = vmul.f32 %v684_v53, %v154_v55 }
 0x113   :  { %v136_v58 = vmul.f32 0.5, %v135_v56 }
 0x114   :  { %v156_v59 = vmul.f32 0.5, %v155_v57 }
 0x115   :  { %v137_v60 = vsub.f32 1.5, %v136_v58 }
 0x116   :  { %v686_v61 = vpop.eup %685  ;;  %v157_v62 = vsub.f32 1.5, %v156_v59 }
 0x117   :  { %v688_v63 = vpop.eup %687  ;;  %v164_v0 = vmul.f32 %v686_v61, %v132_v51  ;;  %v138_v10 = vmul.f32 %v682_v50, %v137_v60  ;;  %vm170_vm8 = vweird.f32 %v686_v61 }
 0x118   :  { %v158_v1 = vmul.f32 %v684_v53, %v157_v62  ;;  %v144_v2 = vmul.f32 %v688_v63, %v130_v52  ;;  %vm171_vm9 = vmor %vm169_vm7, %vm170_vm8  ;;  %vm150_vm10 = vweird.f32 %v688_v63 }
 0x119   :  { %v165_v3 = vmul.f32 %v686_v61, %v164_v0  ;;  %v142_v7 = vsel %vm141_vm6, %v682_v50, %v138_v10  ;;  %vm151_vm12 = vmor %vm149_vm11, %vm150_vm10 }
 0x11a   :  { %v145_v4 = vmul.f32 %v688_v63, %v144_v2  ;;  %v162_v5 = vsel %vm161_vm4, %v684_v53, %v158_v1  ;;  %v173_v14 = vmul.f32 %v142_v7, %v939_v16 }
 0x11b   :  { %v166_v6 = vmul.f32 0.5, %v165_v3  ;;  %v175_v11 = vmul.f32 %v162_v5, %v937_v15 }
 0x11c   :  { %v146_v8 = vmul.f32 0.5, %v145_v4  ;;  %v180_v27 = vmul.f32 %v677_v13, %v173_v14 }
 0x11d   :  { %v167_v9 = vsub.f32 1.5, %v166_v6  ;;  %v182_v25 = vmul.f32 %v677_v13, %v175_v11 }
 0x11e   :  { %v147_v12 = vsub.f32 1.5, %v146_v8  ;;  %v187_v31 = vadd.f32 %v678_v22, %v180_v27 }
 0x11f   :  { %v168_v17 = vmul.f32 %v686_v61, %v167_v9  ;;  %v189_v29 = vadd.f32 %v678_v22, %v182_v25 }
 0x120   :  { %v148_v18 = vmul.f32 %v688_v63, %v147_v12 }
 0x121   :  { %v172_v19 = vsel %vm171_vm9, %v686_v61, %v168_v17 }
 0x122   :  { %v176_v20 = vmul.f32 %v172_v19, %v947_v23  ;;  %v152_v21 = vsel %vm151_vm12, %v688_v63, %v148_v18  ;;  %v225_v23 = vld [vmem:[%s979_s4] sm:$0x7]  ;;  %s876_s4 = smov [#allocation10]  }
 0x123   :  { %v174_v26 = vmul.f32 %v152_v21, %v949_v24  ;;  %v227_v35 = vperm.slane %v225_v23, 0  ;;  %v228_v36 = vperm.slane %v225_v23, 1  ;;  %v229_v49 = vperm.slane %v225_v23, 2  ;;  %s450_s23 = sshll.u32 %s876_s4, 4  ;;  %s451_s23 = int_to_ptr.vmem [resolvable:$true] %s450_s23 }
 0x124   :  { %v183_v15 = vmul.f32 %v677_v13, %v176_v20 }
 0x125   :  { %v181_v28 = vmul.f32 %v677_v13, %v174_v26 }
 0x126   :  { %v190_v30 = vadd.f32 %v678_v22, %v183_v15 }
 0x127   :  { %v188_v32 = vadd.f32 %v678_v22, %v181_v28 }
 0x128   :  { %v192_v16 = vpack.c.bf16 %v190_v30, %v189_v29 }
 0x129   :  { %v191_v33 = vpack.c.bf16 %v188_v32, %v187_v31 }
 0x12a   :  { %374 = vmatmul.bf16.vlgmr.msra.gmra.mxu3 %v192_v16 }
 0x12b   :  { %369 = vmatmul.bf16.vlgmr.msra.gmra.mxu0 %v191_v33  ;;  %388 = vmatmul.bf16.vlgmr.msra.gmra.mxu1 %v191_v33 }
 0x12c   :  { %407 = vmatmul.bf16.vlgmr.msra.gmra.mxu2 %v191_v33 }
 0x13b   :  { %393 = vmatmul.bf16.gmra.mxu1 %v192_v16 }
 0x13c   :  { %412 = vmatmul.bf16.gmra.mxu2 %v192_v16 }
 0x1a8   :  { %v370_v24 = vpop.f32.mrf.mxu0  ;;  %v389_v34 = vpop.f32.mrf.mxu1 }
 0x1a9   :  { %v371_v38 = vadd.f32 %v370_v24, %v227_v35  ;;  %v390_v42 = vadd.f32 %v389_v34, %v228_v36 }
 0x1ab   :  { %v418_v45 = vmul.f32 0.17677669, %v371_v38 }
 0x1ad   :  { %v375_v37 = vpop.f32.mrf.mxu3 }
 0x1ae   :  { %v376_v48 = vadd.f32 %v375_v37, %v227_v35 }
 0x1af   :  { %v408_v39 = vpop.f32.mrf.mxu2 }
 0x1b0   :  { %v372_v40 = vpop.f32.mrf.mxu0  ;;  %v391_v41 = vpop.f32.mrf.mxu1  ;;  %v420_v54 = vmul.f32 0.17677669, %v376_v48  ;;  %v409_v55 = vadd.f32 %v408_v39, %v229_v49 }
 0x1b1   :  { %v373_v43 = vadd.f32 %v372_v40, %v227_v35  ;;  %v392_v44 = vadd.f32 %v391_v41, %v228_v36 }
 0x1b3   :  { %v419_v46 = vmul.f32 0.17677669, %v373_v43  ;;  %v635_v47 = vpack.c.bf16 %v392_v44, %v390_v42 }
 0x1b5   :  { %v625_v50 = vpack.c.bf16 %v419_v46, %v418_v45  ;;  %636 = vst [vmem:[#allocation11] sm:$0xff] %v635_v47   ;;  %v377_v51 = vpop.f32.mrf.mxu3 }
 0x1b6   :  { %v378_v52 = vadd.f32 %v377_v51, %v227_v35 }
 0x1b7   :  { %626 = vst [vmem:[#allocation10] sm:$0xff] %v625_v50   ;;  %v410_v53 = vpop.f32.mrf.mxu2 }
 0x1b8   :  { %v421_v56 = vmul.f32 0.17677669, %v378_v52  ;;  %v411_v57 = vadd.f32 %v410_v53, %v229_v49  ;;  %v394_v58 = vpop.f32.mrf.mxu1 }
 0x1b9   :  { %v395_v63 = vadd.f32 %v394_v58, %v228_v36 }
 0x1ba   :  { %v630_v59 = vpack.c.bf16 %v421_v56, %v420_v54  ;;  %v645_v60 = vpack.c.bf16 %v411_v57, %v409_v55 }
 0x1bc   :  { %652 = vst [vmem:[#allocation10 + $0x8] sm:$0xff] %v630_v59  }
 0x1bd   :  { %646 = vst [vmem:[#allocation13] sm:$0xff] %v645_v60   ;;  %458 = dma.vmem_to_hbm [thread:$0]  %s451_s23, 256, %s453_s26, [#allocation4], %s877_s27, %s877_s27, %s878_s28  }
 0x1bf   :  { %v413_v61 = vpop.f32.mrf.mxu2 }
 0x1c0   :  { %v396_v62 = vpop.f32.mrf.mxu1  ;;  %v414_v2 = vadd.f32 %v413_v61, %v229_v49 }
 0x1c1   :  { %v397_v0 = vadd.f32 %v396_v62, %v228_v36 }
 0x1c3   :  { %v640_v10 = vpack.c.bf16 %v397_v0, %v395_v63 }
 0x1c5   :  { %653 = vst [vmem:[#allocation11 + $0x8] sm:$0xff] %v640_v10  }
 0x1c6   :  { %471 = dma.vmem_to_hbm [thread:$0]  %s464_s30, 256, %s466_s9, [#allocation12], %s877_s27, %s877_s27, %s878_s28  }
 0x1c7   :  { %v415_v1 = vpop.f32.mrf.mxu2 }
 0x1c8   :  { %v416_v3 = vadd.f32 %v415_v1, %v229_v49 }
 0x1ca   :  { %v650_v4 = vpack.c.bf16 %v416_v3, %v414_v2 }
 0x1cc   :  { %654 = vst [vmem:[#allocation13 + $0x8] sm:$0xff] %v650_v4  }
 0x1cd   :  { %484 = dma.vmem_to_hbm [thread:$0]  %s477_s11, 256, %s479_s14, [#allocation12], %s877_s27, %s877_s27, %s878_s28  }
 0x1ce   :  { %863 = dma.done.wait [#allocation4], 256  }
 0x1cf   :  { %864 = vsyncadd [#allocation4], 4294967040 }
 0x1d0   :  { %865 = dma.done.wait [#allocation12], 512  }
 0x1d1   :  { %866 = vsyncadd [#allocation12], 4294966784 }
 0x1d2   :  { %497 = vsyncpa [#allocation3], 1 }
 0x1d3   :  { %498 = vsyncpa [#allocation6], 1 }
 0x1d4   :  { %499 = vsyncpa [#allocation9], 1 }
 0x1d5   :  { %500 = vsyncpa [#allocation4], 1 }
 0x1d6   :  { %501 = vsyncpa [#allocation12], 1 }

</bundles_post_ra>
